<compile_context>
chip_gen: v5e
topology: v5e:2x2
jax: 0.10.0
libtpu: 0.0.40
codegen_flags: <defaults>
</compile_context>

<pallas_src>
import functools

import jax
import jax.numpy as jnp
from jax.experimental import pallas as pl
from jax.experimental.pallas import tpu as pltpu

_LANE = 128               # pad layer OUTPUT feature dims to this (lane-dense)
_MAX_FULL_BATCH = 512     # below this, one full-batch tile (grid=(1,))
_TILE_B = 256             # batch tile above that (multiple of bf16 sublane 16)


def _round_up(n, m):
    return ((n + m - 1) // m) * m


def _mlp_kernel(*refs, activation, n_layers):
    """Fused MLP: refs = (x, w0, b0, w1, b1, ..., w_{L-1}, b_{L-1}, out).

    x is f32 (cast to bf16 here, on the VPU), w_i are bf16 (MXU native),
    biases and output are f32.  Activation after every layer except the last.
    The layer loop is statically unrolled; the running activation stays in
    VMEM/vregs — no per-layer HBM round trips.
    """
    x_ref = refs[0]
    o_ref = refs[-1]
    wb = refs[1:-1]

    x = x_ref[...].astype(jnp.bfloat16)              # (TB, Din) bf16
    for i in range(n_layers):
        w = wb[2 * i][...]                           # (K_i, N_i_p) bf16
        b = wb[2 * i + 1][...]                       # (1, N_i_p) f32
        y = jnp.dot(x, w, preferred_element_type=jnp.float32) + b
        if i < n_layers - 1:
            if activation == "relu":
                y = jnp.maximum(y, 0.0)
            elif activation == "tanh":
                y = jnp.tanh(y)
            elif activation == "sigmoid":
                y = jax.nn.sigmoid(y)
            else:
                raise NotImplementedError(activation)
            x = y.astype(jnp.bfloat16)               # feed next MXU pass in bf16
        else:
            o_ref[...] = y                           # f32, lane-dense store


def init_mlp_params(key, input_dim, output_dim, hidden_size, hidden_layers):
    """PyTorch nn.Linear-style init: U(-1/sqrt(fan_in), 1/sqrt(fan_in))."""
    dims = [input_dim] + [hidden_size] * (hidden_layers + 1) + [output_dim]
    params = []
    for i in range(len(dims) - 1):
        fan_in, fan_out = dims[i], dims[i + 1]
        key, kw, kb = jax.random.split(key, 3)
        bound = 1.0 / (fan_in ** 0.5)
        w = jax.random.uniform(kw, (fan_in, fan_out), jnp.float32, -bound, bound)
        b = jax.random.uniform(kb, (fan_out,), jnp.float32, -bound, bound)
        params.append((w, b))
    return params


def prepare_params(params):
    """One-time preprocessing (NOT per forward):
      * each layer's OUTPUT dim is zero-padded to a multiple of 128;
      * layer i>0's INPUT (contraction) dim is padded to the previous layer's
        padded output dim (zero rows => padded activation lanes cancel exactly,
        even for sigmoid/tanh);
      * layer 0's contraction dim is left at input_dim (x is passed unpadded);
      * weights cast to bf16 (MXU), biases to f32 row-vectors.
    """
    prepared = []
    prev_out_p = None
    for idx, (w, b) in enumerate(params):
        din, dout = w.shape
        k_p = din if idx == 0 else prev_out_p
        dout_p = _round_up(dout, _LANE)
        w_p = jnp.zeros((k_p, dout_p), jnp.bfloat16)
        w_p = w_p.at[:din, :dout].set(w.astype(jnp.bfloat16))
        b_p = jnp.zeros((1, dout_p), jnp.float32)
        b_p = b_p.at[0, :dout].set(b.astype(jnp.float32))
        prepared.append((w_p, b_p))
        prev_out_p = dout_p
    return prepared


@functools.partial(jax.jit, static_argnames=("activation", "output_dim"))
def neural_network_forward(s, prepared_params, activation, output_dim):
    """Matches NeuralNetwork.forward: activation after every layer except last."""
    batch, input_dim = s.shape
    n_layers = len(prepared_params)
    dout_p = prepared_params[-1][0].shape[1]

    # Batch tiling: one full-batch tile at small batch; 256-row tiles otherwise
    # (weights stay resident across tiles via constant index_maps).
    tile_b = batch if batch <= _MAX_FULL_BATCH else _TILE_B
    n_b = pl.cdiv(batch, tile_b)

    flat_wb = [a for wb in prepared_params for a in wb]
    n_in = 1 + 2 * n_layers

    in_specs = [pl.BlockSpec((tile_b, input_dim), lambda i: (i, 0))]
    for w_p, b_p in prepared_params:
        in_specs.append(pl.BlockSpec(w_p.shape, lambda i: (0, 0)))   # resident
        in_specs.append(pl.BlockSpec(b_p.shape, lambda i: (0, 0)))   # resident
    out_spec = pl.BlockSpec((tile_b, dout_p), lambda i: (i, 0))

    # VMEM budget: all weights/biases resident + double-buffered x/out tiles.
    wb_bytes = sum(a.size * a.dtype.itemsize for a in flat_wb)
    io_bytes = tile_b * input_dim * s.dtype.itemsize + tile_b * dout_p * 4
    vmem_limit = int(min(64 << 20, max(16 << 20, 2 * (wb_bytes + io_bytes) + (2 << 20))))

    # Scheduling hint for XLA around the custom call.
    flops = 2 * batch * sum(w.shape[0] * w.shape[1] for w, _ in prepared_params)
    transc = 0 if activation == "relu" else batch * sum(
        w.shape[1] for w, _ in prepared_params[:-1])
    bytes_accessed = s.size * s.dtype.itemsize + wb_bytes + batch * dout_p * 4
    cost = pl.CostEstimate(flops=flops, transcendentals=transc,
                           bytes_accessed=bytes_accessed)

    out_p = pl.pallas_call(
        functools.partial(_mlp_kernel, activation=activation, n_layers=n_layers),
        out_shape=jax.ShapeDtypeStruct((batch, dout_p), jnp.float32),
        grid=(n_b,),
        in_specs=in_specs,
        out_specs=out_spec,
        compiler_params=pltpu.CompilerParams(
            dimension_semantics=("parallel",),      # v7x megacore; harmless on 1-TC chips
            vmem_limit_bytes=vmem_limit),
        cost_estimate=cost,
    )(s, *flat_wb)
    del n_in

    return out_p[:, :output_dim]


if __name__ == "__main__":
    batch = 8
    input_dim = 4
    hidden_size = 32
    hidden_layers = 2
    output_dim = 3
    activation = "relu"

    key = jax.random.PRNGKey(0)
    key, ks = jax.random.split(key)
    s = jax.random.normal(ks, (batch, input_dim), jnp.float32)

    params = init_mlp_params(key, input_dim, output_dim, hidden_size, hidden_layers)
    prepared = prepare_params(params)

    out = neural_network_forward(s, prepared, activation, output_dim)
    jax.block_until_ready(out)

    # Reference 1: same dtype path (bf16 matmul, f32 accumulate) in plain JAX.
    ref = s.astype(jnp.bfloat16)
    for idx, (w, b) in enumerate(params):
        ref = jnp.dot(ref, w.astype(jnp.bfloat16),
                      preferred_element_type=jnp.float32) + b
        if idx != len(params) - 1:
            ref = jnp.maximum(ref, 0.0).astype(jnp.bfloat16)

    # Reference 2: pure f32 (checks bf16 path is still close to exact math).
    ref32 = s
    for idx, (w, b) in enumerate(params):
        ref32 = ref32 @ w + b
        if idx != len(params) - 1:
            ref32 = jnp.maximum(ref32, 0.0)

    assert out.shape == (batch, output_dim)
    assert jnp.allclose(out, ref, atol=1e-4, rtol=1e-4)
    assert jnp.allclose(out, ref32, atol=5e-2, rtol=5e-2)

    print("KERNEL_OK")
</pallas_src>

<mosaic_0001>
module attributes {stable_mosaic.version = 11 : i64} {
  func.func @_mlp_kernel(%arg0: i32, %arg1: memref<8x4xf32, #tpu.memory_space<vmem>>, %arg2: memref<4x128xbf16, #tpu.memory_space<vmem>>, %arg3: memref<1x128xf32, #tpu.memory_space<vmem>>, %arg4: memref<128x128xbf16, #tpu.memory_space<vmem>>, %arg5: memref<1x128xf32, #tpu.memory_space<vmem>>, %arg6: memref<128x128xbf16, #tpu.memory_space<vmem>>, %arg7: memref<1x128xf32, #tpu.memory_space<vmem>>, %arg8: memref<128x128xbf16, #tpu.memory_space<vmem>>, %arg9: memref<1x128xf32, #tpu.memory_space<vmem>>, %arg10: memref<8x128xf32, #tpu.memory_space<vmem>>) attributes {dimension_semantics = [#tpu.dimension_semantics<parallel>], iteration_bounds = array<i64: 1>, scalar_prefetch = 0 : i64, scratch_operands = 0 : i64, tpu.core_type = #tpu.core_type<tc>, window_params = [{transform_indices = @transform_0, window_bounds = array<i64: 8, 4>}, {pipeline_mode = #tpu.pipeline_mode<synchronous>, transform_indices = @transform_1, window_bounds = array<i64: 4, 128>}, {pipeline_mode = #tpu.pipeline_mode<synchronous>, transform_indices = @transform_2, window_bounds = array<i64: 1, 128>}, {pipeline_mode = #tpu.pipeline_mode<synchronous>, transform_indices = @transform_3, window_bounds = array<i64: 128, 128>}, {pipeline_mode = #tpu.pipeline_mode<synchronous>, transform_indices = @transform_4, window_bounds = array<i64: 1, 128>}, {pipeline_mode = #tpu.pipeline_mode<synchronous>, transform_indices = @transform_5, window_bounds = array<i64: 128, 128>}, {pipeline_mode = #tpu.pipeline_mode<synchronous>, transform_indices = @transform_6, window_bounds = array<i64: 1, 128>}, {pipeline_mode = #tpu.pipeline_mode<synchronous>, transform_indices = @transform_7, window_bounds = array<i64: 128, 128>}, {pipeline_mode = #tpu.pipeline_mode<synchronous>, transform_indices = @transform_8, window_bounds = array<i64: 1, 128>}, {transform_indices = @transform_9, window_bounds = array<i64: 8, 128>}]} {
    %c0 = arith.constant 0 : index
    %c0_0 = arith.constant 0 : index
    %0 = vector.load %arg1[%c0, %c0_0] : memref<8x4xf32, #tpu.memory_space<vmem>>, vector<8x4xf32>
    %1 = arith.truncf %0 : vector<8x4xf32> to vector<8x4xbf16>
    %c0_1 = arith.constant 0 : index
    %c0_2 = arith.constant 0 : index
    %2 = vector.load %arg2[%c0_1, %c0_2] : memref<4x128xbf16, #tpu.memory_space<vmem>>, vector<4x128xbf16>
    %c0_3 = arith.constant 0 : index
    %c0_4 = arith.constant 0 : index
    %3 = vector.load %arg3[%c0_3, %c0_4] : memref<1x128xf32, #tpu.memory_space<vmem>>, vector<1x128xf32>
    %cst = arith.constant dense<0.000000e+00> : vector<8x128xf32>
    %4 = tpu.matmul %1, %2, %cst {dimension_numbers = #tpu.dot_dimension_numbers<[1], [0], [0], [1], [0, 0, 1, 1], [], []>} : vector<8x4xbf16>, vector<4x128xbf16>, vector<8x128xf32> -> vector<8x128xf32>
    %5 = vector.broadcast %3 : vector<1x128xf32> to vector<8x128xf32>
    %6 = arith.addf %4, %5 : vector<8x128xf32>
    %cst_5 = arith.constant 0.000000e+00 : f32
    %7 = vector.broadcast %cst_5 : f32 to vector<8x128xf32>
    %8 = arith.maximumf %6, %7 : vector<8x128xf32>
    %9 = arith.truncf %8 : vector<8x128xf32> to vector<8x128xbf16>
    %c0_6 = arith.constant 0 : index
    %c0_7 = arith.constant 0 : index
    %10 = vector.load %arg4[%c0_6, %c0_7] : memref<128x128xbf16, #tpu.memory_space<vmem>>, vector<128x128xbf16>
    %c0_8 = arith.constant 0 : index
    %c0_9 = arith.constant 0 : index
    %11 = vector.load %arg5[%c0_8, %c0_9] : memref<1x128xf32, #tpu.memory_space<vmem>>, vector<1x128xf32>
    %cst_10 = arith.constant dense<0.000000e+00> : vector<8x128xf32>
    %12 = tpu.matmul %9, %10, %cst_10 {dimension_numbers = #tpu.dot_dimension_numbers<[1], [0], [0], [1], [0, 0, 1, 1], [], []>} : vector<8x128xbf16>, vector<128x128xbf16>, vector<8x128xf32> -> vector<8x128xf32>
    %13 = vector.broadcast %11 : vector<1x128xf32> to vector<8x128xf32>
    %14 = arith.addf %12, %13 : vector<8x128xf32>
    %cst_11 = arith.constant 0.000000e+00 : f32
    %15 = vector.broadcast %cst_11 : f32 to vector<8x128xf32>
    %16 = arith.maximumf %14, %15 : vector<8x128xf32>
    %17 = arith.truncf %16 : vector<8x128xf32> to vector<8x128xbf16>
    %c0_12 = arith.constant 0 : index
    %c0_13 = arith.constant 0 : index
    %18 = vector.load %arg6[%c0_12, %c0_13] : memref<128x128xbf16, #tpu.memory_space<vmem>>, vector<128x128xbf16>
    %c0_14 = arith.constant 0 : index
    %c0_15 = arith.constant 0 : index
    %19 = vector.load %arg7[%c0_14, %c0_15] : memref<1x128xf32, #tpu.memory_space<vmem>>, vector<1x128xf32>
    %cst_16 = arith.constant dense<0.000000e+00> : vector<8x128xf32>
    %20 = tpu.matmul %17, %18, %cst_16 {dimension_numbers = #tpu.dot_dimension_numbers<[1], [0], [0], [1], [0, 0, 1, 1], [], []>} : vector<8x128xbf16>, vector<128x128xbf16>, vector<8x128xf32> -> vector<8x128xf32>
    %21 = vector.broadcast %19 : vector<1x128xf32> to vector<8x128xf32>
    %22 = arith.addf %20, %21 : vector<8x128xf32>
    %cst_17 = arith.constant 0.000000e+00 : f32
    %23 = vector.broadcast %cst_17 : f32 to vector<8x128xf32>
    %24 = arith.maximumf %22, %23 : vector<8x128xf32>
    %25 = arith.truncf %24 : vector<8x128xf32> to vector<8x128xbf16>
    %c0_18 = arith.constant 0 : index
    %c0_19 = arith.constant 0 : index
    %26 = vector.load %arg8[%c0_18, %c0_19] : memref<128x128xbf16, #tpu.memory_space<vmem>>, vector<128x128xbf16>
    %c0_20 = arith.constant 0 : index
    %c0_21 = arith.constant 0 : index
    %27 = vector.load %arg9[%c0_20, %c0_21] : memref<1x128xf32, #tpu.memory_space<vmem>>, vector<1x128xf32>
    %cst_22 = arith.constant dense<0.000000e+00> : vector<8x128xf32>
    %28 = tpu.matmul %25, %26, %cst_22 {dimension_numbers = #tpu.dot_dimension_numbers<[1], [0], [0], [1], [0, 0, 1, 1], [], []>} : vector<8x128xbf16>, vector<128x128xbf16>, vector<8x128xf32> -> vector<8x128xf32>
    %29 = vector.broadcast %27 : vector<1x128xf32> to vector<8x128xf32>
    %30 = arith.addf %28, %29 : vector<8x128xf32>
    %c0_23 = arith.constant 0 : index
    %c0_24 = arith.constant 0 : index
    %31 = vector.load %arg10[%c0_23, %c0_24] : memref<8x128xf32, #tpu.memory_space<vmem>>, vector<8x128xf32>
    tpu.vector_store %arg10[%c0_23, %c0_24], %30 {strides = array<i32>} : memref<8x128xf32, #tpu.memory_space<vmem>>, vector<8x128xf32>,
    return
  }
  func.func @transform_0(%arg0: i32) -> (i32, i32) {
    %c0_i32 = arith.constant 0 : i32
    %c0_i32_0 = arith.constant 0 : i32
    return %arg0, %c0_i32 : i32, i32
  }
  func.func @transform_1(%arg0: i32) -> (i32, i32) {
    %c0_i32 = arith.constant 0 : i32
    %c0_i32_0 = arith.constant 0 : i32
    %c0_i32_1 = arith.constant 0 : i32
    return %c0_i32, %c0_i32_0 : i32, i32
  }
  func.func @transform_2(%arg0: i32) -> (i32, i32) {
    %c0_i32 = arith.constant 0 : i32
    %c0_i32_0 = arith.constant 0 : i32
    %c0_i32_1 = arith.constant 0 : i32
    return %c0_i32, %c0_i32_0 : i32, i32
  }
  func.func @transform_3(%arg0: i32) -> (i32, i32) {
    %c0_i32 = arith.constant 0 : i32
    %c0_i32_0 = arith.constant 0 : i32
    %c0_i32_1 = arith.constant 0 : i32
    return %c0_i32, %c0_i32_0 : i32, i32
  }
  func.func @transform_4(%arg0: i32) -> (i32, i32) {
    %c0_i32 = arith.constant 0 : i32
    %c0_i32_0 = arith.constant 0 : i32
    %c0_i32_1 = arith.constant 0 : i32
    return %c0_i32, %c0_i32_0 : i32, i32
  }
  func.func @transform_5(%arg0: i32) -> (i32, i32) {
    %c0_i32 = arith.constant 0 : i32
    %c0_i32_0 = arith.constant 0 : i32
    %c0_i32_1 = arith.constant 0 : i32
    return %c0_i32, %c0_i32_0 : i32, i32
  }
  func.func @transform_6(%arg0: i32) -> (i32, i32) {
    %c0_i32 = arith.constant 0 : i32
    %c0_i32_0 = arith.constant 0 : i32
    %c0_i32_1 = arith.constant 0 : i32
    return %c0_i32, %c0_i32_0 : i32, i32
  }
  func.func @transform_7(%arg0: i32) -> (i32, i32) {
    %c0_i32 = arith.constant 0 : i32
    %c0_i32_0 = arith.constant 0 : i32
    %c0_i32_1 = arith.constant 0 : i32
    return %c0_i32, %c0_i32_0 : i32, i32
  }
  func.func @transform_8(%arg0: i32) -> (i32, i32) {
    %c0_i32 = arith.constant 0 : i32
    %c0_i32_0 = arith.constant 0 : i32
    %c0_i32_1 = arith.constant 0 : i32
    return %c0_i32, %c0_i32_0 : i32, i32
  }
  func.func @transform_9(%arg0: i32) -> (i32, i32) {
    %c0_i32 = arith.constant 0 : i32
    %c0_i32_0 = arith.constant 0 : i32
    return %arg0, %c0_i32 : i32, i32
  }
}

</mosaic_0001>

<bundles_post_ra>
// kernel: neural_network_forward.1
= control target key start
LH: loop header
LB: loop body
LE: loop exit
PB: predicated region body
PF: predicated region fallthrough
CT: control target
= control target key end

     0   :  { %14 = vsyncpa [#allocation3], 0  ;;  %s655_s0 = inlined_call_operand.vmem [shape: f32[8,4], index: 0, kind: input, shape index: {}]   ;;  %s656_s1 = inlined_call_operand.vmem [shape: bf16[4,128], index: 1, kind: input, shape index: {}]   ;;  %s657_s2 = inlined_call_operand.vmem [shape: f32[1,128], index: 2, kind: input, shape index: {}]   ;;  %s658_s3 = inlined_call_operand.hbm [shape: bf16[128,128], index: 3, kind: input, shape index: {}]   ;;  %s659_s4 = inlined_call_operand.vmem [shape: f32[1,128], index: 4, kind: input, shape index: {}]   ;;  %s660_s5 = inlined_call_operand.hbm [shape: bf16[128,128], index: 5, kind: input, shape index: {}]   ;;  %s661_s6 = inlined_call_operand.vmem [shape: f32[1,128], index: 6, kind: input, shape index: {}]   ;;  %s662_s7 = inlined_call_operand.hbm [shape: bf16[128,128], index: 7, kind: input, shape index: {}]   ;;  %s663_s8 = inlined_call_operand.vmem [shape: f32[1,128], index: 8, kind: input, shape index: {}]   ;;  %s664_s9 = inlined_call_operand.vmem [shape: f32[8,128], index: 9, kind: output, shape index: {}]  }
   0x1   :  { %15 = vsyncpa [#allocation5], 0  ;;  %s41_s11 = sshll.u32 %s660_s5, 4  ;;  %s570_s12 = smov [#allocation4]   ;;  %s42_s11 = int_to_ptr.hbm [resolvable:$true] %s41_s11 }
   0x2   :  { %s43_s13 = sshll.u32 %s570_s12, 4  ;;  %s26_s16 = sshll.u32 %s658_s3, 4  ;;  %s44_s13 = int_to_ptr.vmem [resolvable:$true] %s43_s13  ;;  %s27_s16 = int_to_ptr.hbm [resolvable:$true] %s26_s16 }
   0x3   :  { %s571_s17 = smov 64   ;;  %s572_s18 = smov 4  }
   0x4   :  { %49 = dma.hbm_to_vmem [thread:$0]  %s42_s11, 1024, %s44_s13, [#allocation5], %s571_s17, %s571_s17, %s572_s18  }
   0x5   :  { %s573_s19 = smov [#allocation2]   ;;  %s56_s23 = sshll.u32 %s662_s7, 4  ;;  %s57_s23 = int_to_ptr.hbm [resolvable:$true] %s56_s23 }
   0x6   :  { %s28_s20 = sshll.u32 %s573_s19, 4  ;;  %s574_s5 = smov [#allocation6]   ;;  %s29_s20 = int_to_ptr.vmem [resolvable:$true] %s28_s20 }
   0x7   :  { %34 = dma.hbm_to_vmem [thread:$0]  %s27_s16, 1024, %s29_s20, [#allocation3], %s571_s17, %s571_s17, %s572_s18  }
   0x8   :  { %s58_s24 = sshll.u32 %s574_s5, 4  ;;  %s59_s24 = int_to_ptr.vmem [resolvable:$true] %s58_s24 }
   0x9   :  { %64 = dma.hbm_to_vmem [thread:$0]  %s57_s23, 1024, %s59_s24, [#allocation5], %s571_s17, %s571_s17, %s572_s18  }
   0xa   :  { %566 = dma.done.wait [#allocation3], 1024  }
   0xb   :  { %567 = vsyncadd [#allocation3], 4294966272 }
   0xc   :  { %568 = dma.done.wait [#allocation5], 2048  }
   0xd   :  { %569 = vsyncadd [#allocation5], 4294965248  ;;  %vm91_vm0 = vcmask 1041408   ;;  %v82_v0 = vld [vmem:[%s656_s1] sm:$0x3]  ;;  %v468_v2 = vld [vmem:[#allocation2 + $0x38] sm:$0xff] }
   0xe   :  { %v80_v1 = vld [vmem:[%s655_s0] sm:$0xff]  ;;  %v93_v3 = vsel %vm91_vm0, %v82_v0, 0  ;;  %vm87_vm1 = vcmask 31744   ;;  %178 = vmatpush.bf16.msra.mxu1 %v468_v2  ;;  %v467_v5 = vld [vmem:[#allocation2 + $0x30] sm:$0xff]  ;;  %v466_v6 = vld [vmem:[#allocation2 + $0x28] sm:$0xff] }
   0xf   :  { %v81_v4 = vpack.c.bf16 %v80_v1, %v80_v1  ;;  %102 = vmatpush.bf16.msra.mxu0 %v93_v3  ;;  %v465_v7 = vld [vmem:[#allocation2 + $0x20] sm:$0xff]  ;;  %v464_v8 = vld [vmem:[#allocation2 + $0x18] sm:$0xff]  ;;  %v463_v9 = vld [vmem:[#allocation2 + $0x10] sm:$0xff] }
  0x10   :  { %v462_v10 = vld [vmem:[#allocation2 + $0x8] sm:$0xff]  ;;  %v461_v11 = vld [vmem:[#allocation2] sm:$0xff]  ;;  %v476_v12 = vld [vmem:[#allocation4 + $0x38] sm:$0xff] }
  0x11   :  { %261 = vmatpush.bf16.msra.mxu2 %v476_v12  ;;  %v475_v13 = vld [vmem:[#allocation4 + $0x30] sm:$0xff]  ;;  %v474_v14 = vld [vmem:[#allocation4 + $0x28] sm:$0xff]  ;;  %v473_v15 = vld [vmem:[#allocation4 + $0x20] sm:$0xff] }
  0x12   :  { %364 = vmatmul.msk.bf16.vlgmr.msra.gmra.mxu0 %vm87_vm1, %v81_v4  ;;  %179 = vmatpush.bf16.msra.mxu1 %v467_v5  ;;  %v472_v16 = vld [vmem:[#allocation4 + $0x18] sm:$0xff]  ;;  %v471_v17 = vld [vmem:[#allocation4 + $0x10] sm:$0xff]  ;;  %v490_v18 = vld [vmem:[%s657_s2] ss:$0 sm:$0xff] }
  0x13   :  { %v470_v24 = vld [vmem:[#allocation4 + $0x8] sm:$0xff]  ;;  %v469_v25 = vld [vmem:[#allocation4] sm:$0xff]  ;;  %v484_v26 = vld [vmem:[#allocation6 + $0x38] sm:$0xff] }
  0x14   :  { %344 = vmatpush.bf16.msra.mxu3 %v484_v26  ;;  %v483_v27 = vld [vmem:[#allocation6 + $0x30] sm:$0xff]  ;;  %v482_v28 = vld [vmem:[#allocation6 + $0x28] sm:$0xff]  ;;  %v481_v29 = vld [vmem:[#allocation6 + $0x20] sm:$0xff] }
  0x15   :  { %262 = vmatpush.bf16.msra.mxu2 %v475_v13  ;;  %v480_v30 = vld [vmem:[#allocation6 + $0x18] sm:$0xff]  ;;  %v479_v31 = vld [vmem:[#allocation6 + $0x10] sm:$0xff]  ;;  %v491_v32 = vld [vmem:[%s659_s4] ss:$0 sm:$0xff] }
  0x16   :  { %180 = vmatpush.bf16.msra.mxu1 %v466_v6  ;;  %v478_v38 = vld [vmem:[#allocation6 + $0x8] sm:$0xff]  ;;  %v477_v39 = vld [vmem:[#allocation6] sm:$0xff] }
  0x17   :  { %v492_v40 = vld [vmem:[%s661_s6] ss:$0 sm:$0xff] }
  0x18   :  { %345 = vmatpush.bf16.msra.mxu3 %v483_v27  ;;  %v493_v46 = vld [vmem:[%s663_s8] ss:$0 sm:$0xff] }
  0x19   :  { %263 = vmatpush.bf16.msra.mxu2 %v474_v14 }
  0x1a   :  { %181 = vmatpush.bf16.msra.mxu1 %v465_v7 }
  0x1c   :  { %346 = vmatpush.bf16.msra.mxu3 %v482_v28 }
  0x1d   :  { %264 = vmatpush.bf16.msra.mxu2 %v473_v15 }
  0x1e   :  { %182 = vmatpush.bf16.msra.mxu1 %v464_v8 }
  0x20   :  { %347 = vmatpush.bf16.msra.mxu3 %v481_v29 }
  0x21   :  { %265 = vmatpush.bf16.msra.mxu2 %v472_v16 }
  0x22   :  { %183 = vmatpush.bf16.msra.mxu1 %v463_v9 }
  0x24   :  { %348 = vmatpush.bf16.msra.mxu3 %v480_v30 }
  0x25   :  { %266 = vmatpush.bf16.msra.mxu2 %v471_v17 }
  0x26   :  { %184 = vmatpush.bf16.msra.mxu1 %v462_v10 }
  0x28   :  { %349 = vmatpush.bf16.msra.mxu3 %v479_v31 }
  0x29   :  { %267 = vmatpush.bf16.msra.mxu2 %v470_v24 }
  0x2a   :  { %185 = vmatpush.bf16.msra.mxu1 %v461_v11 }
  0x2c   :  { %350 = vmatpush.bf16.msra.mxu3 %v478_v38 }
  0x2d   :  { %268 = vmatpush.bf16.msra.mxu2 %v469_v25 }
  0x30   :  { %351 = vmatpush.bf16.msra.mxu3 %v477_v39 }
  0x8f   :  { %v104_v19 = vpop.f32.mrf.mxu0 }
  0x90   :  { %v105_v20 = vadd.f32 %v490_v18, %v104_v19 }
  0x92   :  { %v108_v21 = vmax.f32 %v105_v20, 0.0 }
  0x94   :  { %v109_v22 = vpack.c.bf16 %v108_v21, %v108_v21 }
  0x96   :  { %186 = vmatmul.bf16.vlgmr.msra.gmra.mxu1 %v109_v22 }
  0x97   :  { %v106_v23 = vpop.f32.mrf.mxu0 }
 0x113   :  { %v187_v33 = vpop.f32.mrf.mxu1 }
 0x114   :  { %v188_v34 = vadd.f32 %v491_v32, %v187_v33 }
 0x116   :  { %v191_v35 = vmax.f32 %v188_v34, 0.0 }
 0x118   :  { %v192_v36 = vpack.c.bf16 %v191_v35, %v191_v35 }
 0x11a   :  { %269 = vmatmul.bf16.vlgmr.msra.gmra.mxu2 %v192_v36 }
 0x11b   :  { %v189_v37 = vpop.f32.mrf.mxu1 }
 0x19d   :  { %v270_v41 = vpop.f32.mrf.mxu2 }
 0x19e   :  { %v271_v42 = vadd.f32 %v492_v40, %v270_v41 }
 0x1a0   :  { %v274_v43 = vmax.f32 %v271_v42, 0.0 }
 0x1a2   :  { %v275_v44 = vpack.c.bf16 %v274_v43, %v274_v43 }
 0x1a4   :  { %352 = vmatmul.bf16.vlgmr.msra.gmra.mxu3 %v275_v44 }
 0x1a5   :  { %v272_v45 = vpop.f32.mrf.mxu2 }
 0x227   :  { %v353_v47 = vpop.f32.mrf.mxu3 }
 0x228   :  { %v354_v48 = vadd.f32 %v493_v46, %v353_v47 }
 0x22a   :  { %357 = vst [vmem:[%s664_s9] sm:$0xff] %v354_v48 }
 0x22f   :  { %v355_v49 = vpop.f32.mrf.mxu3 }
 0x230   :  { %362 = vsyncpa [#allocation3], 1 }
 0x231   :  { %363 = vsyncpa [#allocation5], 1 }

</bundles_post_ra>
